<compile_context>
chip_gen: v7x
topology: tpu7x:2x2x1
jax: 0.10.0
libtpu: 0.0.40
codegen_flags: <defaults>
</compile_context>

<pallas_src>
import functools

import jax
import jax.numpy as jnp
from jax.experimental import pallas as pl
from jax.experimental.pallas import tpu as pltpu

LRELU_SLOPE = 0.1  # modules.LRELU_SLOPE in the reference implementation
_VMEM_LIMIT = 48 * 1024 * 1024  # explicit cap; safe on v5e/v6e/v7x


# ----------------------------------------------------------------------------
# Pallas kernel: time-tiled dilated Conv1d with fused lrelu / bias / residual /
# tanh.  One grid step = one (batch, time-tile) output block.
# ----------------------------------------------------------------------------
def _conv1d_kernel(x_ref, h_ref, w_ref, b_ref, *rest, K, dilation, t_tile, c_in,
                   slope, tanh_out, has_residual, collapse):
    # x_ref : (1, C_in, T_TILE)     main input window (bf16 or f32)
    # h_ref : (1, C_in, HALO_BLK)   right halo block of the same array
    # w_ref : (C_out, K*C_in)       bf16 weight, tap-major rows
    # b_ref : (C_out, 1)            f32 bias
    # rest  : [res_ref,] o_ref, win_ref, stack_ref
    if has_residual:
        r_ref, o_ref, win_ref, stack_ref = rest
    else:
        o_ref, win_ref, stack_ref = rest

    xm = x_ref[0]
    xh = h_ref[0]
    if slope is not None:
        # leaky_relu fused on the input; exact on zero padding (lrelu(0) == 0).
        xm = jnp.where(xm >= 0, xm, slope * xm)
        xh = jnp.where(xh >= 0, xh, slope * xh)
    # Contiguous (C_in, T_TILE + HALO_BLK) bf16 window in VMEM.
    win_ref[:, :t_tile] = xm.astype(win_ref.dtype)
    win_ref[:, t_tile:] = xh.astype(win_ref.dtype)

    c_out = o_ref.shape[1]
    if collapse:
        # Stack the K shifted windows -> one big MXU contraction (K*C_in).
        for k in range(K):
            off = k * dilation
            stack_ref[k * c_in:(k + 1) * c_in, :] = win_ref[:, off:off + t_tile]
        acc = jnp.dot(w_ref[...], stack_ref[...],
                      preferred_element_type=jnp.float32)
    else:
        acc = jnp.zeros((c_out, t_tile), jnp.float32)
        for k in range(K):  # K small & static -> unrolled taps
            off = k * dilation
            acc = acc + jnp.dot(w_ref[:, k * c_in:(k + 1) * c_in],
                                win_ref[:, off:off + t_tile],
                                preferred_element_type=jnp.float32)

    acc = acc + b_ref[...]
    if has_residual:
        acc = acc + r_ref[0].astype(jnp.float32)   # fused resblock skip-add
    if tanh_out:
        acc = jnp.tanh(acc)
    o_ref[0] = acc.astype(o_ref.dtype)


def conv1d_core(x, w2, b2, *, K, dilation, padding, slope=None, tanh_out=False,
                residual=None, out_dtype=jnp.bfloat16, t_tile=None):
    """Dilated Conv1d.  x: (B,C_in,T); w2: (C_out, K*C_in) bf16; b2: (C_out,1) f32."""
    B, C_in, T = x.shape
    C_out = w2.shape[0]
    halo = dilation * (K - 1)
    T_out = T + 2 * padding - halo
    assert padding >= 0 and T_out >= 1

    halo_blk = max(128, pl.cdiv(halo, 128) * 128)
    if t_tile is None:  # bigger lane tiles for the small-channel (late) stages
        t_tile = 2048 if C_in <= 128 else (1024 if C_in <= 256 else 512)
    t_tile = max(t_tile, halo_blk)
    t_tile = (t_tile // halo_blk) * halo_blk          # multiple of halo_blk
    t_tile = min(t_tile, pl.cdiv(T_out, halo_blk) * halo_blk)
    n_tiles = pl.cdiv(T_out, t_tile)
    tiles_per_halo = t_tile // halo_blk

    T_out_pad = n_tiles * t_tile
    T_in_pad = T_out_pad + halo_blk
    # Host-side zero pad ('same' conv padding + right pad up to the tile grid).
    # TODO(synk): the per-conv pad/slice round-trips could be folded in-kernel
    # with masked edge tiles to save one HBM pass per conv.
    x_p = jnp.pad(x, ((0, 0), (0, 0), (padding, T_in_pad - padding - T)))

    collapse = (K > 1) and (C_in % 16 == 0)
    kern = functools.partial(
        _conv1d_kernel, K=K, dilation=dilation, t_tile=t_tile, c_in=C_in,
        slope=slope, tanh_out=tanh_out, has_residual=residual is not None,
        collapse=collapse)

    in_specs = [
        pl.BlockSpec((1, C_in, t_tile), lambda bi, ti: (bi, 0, ti)),
        pl.BlockSpec((1, C_in, halo_blk),
                     lambda bi, ti: (bi, 0, (ti + 1) * tiles_per_halo)),
        pl.BlockSpec((C_out, K * C_in), lambda bi, ti: (0, 0)),
        pl.BlockSpec((C_out, 1), lambda bi, ti: (0, 0)),
    ]
    inputs = [x_p, x_p, w2, b2]
    if residual is not None:
        assert residual.shape == (B, C_out, T_out)
        res_p = jnp.pad(residual, ((0, 0), (0, 0), (0, T_out_pad - T_out)))
        in_specs.append(pl.BlockSpec((1, C_out, t_tile),
                                     lambda bi, ti: (bi, 0, ti)))
        inputs.append(res_p)

    stack_shape = (K * C_in, t_tile) if collapse else (8, 128)  # dummy if unused
    out = pl.pallas_call(
        kern,
        out_shape=jax.ShapeDtypeStruct((B, C_out, T_out_pad), out_dtype),
        grid=(B, n_tiles),
        in_specs=in_specs,
        out_specs=pl.BlockSpec((1, C_out, t_tile), lambda bi, ti: (bi, 0, ti)),
        scratch_shapes=[pltpu.VMEM((C_in, t_tile + halo_blk), jnp.bfloat16),
                        pltpu.VMEM(stack_shape, jnp.bfloat16)],
        compiler_params=pltpu.CompilerParams(
            dimension_semantics=("parallel", "parallel"),
            vmem_limit_bytes=_VMEM_LIMIT),
    )(*inputs)
    return out[:, :, :T_out]


# ----------------------------------------------------------------------------
# Polyphase ConvTranspose1d: `stride` dense convs + interleave + crop
# ----------------------------------------------------------------------------
def conv_transpose1d_poly(x, entry, *, slope):
    B, C_in, T = x.shape
    stride, K, M, p = entry['stride'], entry['K'], entry['M'], entry['ct_padding']
    assert p >= 0
    zs = [conv1d_core(x, ph['w2'], ph['b'], K=M, dilation=1, padding=M - 1,
                      slope=slope)
          for ph in entry['phases']]
    C_out = zs[0].shape[1]
    Q = T + M - 1
    # TODO(synk): the interleave could be a lane-dense strided store in-kernel.
    y_full = jnp.stack(zs, axis=-1).reshape(B, C_out, Q * stride)
    T_out = (T - 1) * stride - 2 * p + K
    return y_full[:, :, p:p + T_out]


# ----------------------------------------------------------------------------
# ResBlocks (residual add fused into the final conv of each pair)
# ----------------------------------------------------------------------------
def resblock1_fwd(x, layers):
    for c1, c2 in layers:
        xt = conv1d_core(x, c1['w2'], c1['b'], K=c1['K'], dilation=c1['dilation'],
                         padding=c1['padding'], slope=LRELU_SLOPE)
        x = conv1d_core(xt, c2['w2'], c2['b'], K=c2['K'], dilation=c2['dilation'],
                        padding=c2['padding'], slope=LRELU_SLOPE, residual=x)
    return x


def resblock2_fwd(x, layers):
    for c in layers:
        x = conv1d_core(x, c['w2'], c['b'], K=c['K'], dilation=c['dilation'],
                        padding=c['padding'], slope=LRELU_SLOPE, residual=x)
    return x


# ----------------------------------------------------------------------------
# Parameter init (deterministic synthetic weights, PyTorch layout, f32;
# weight_norm only reparameterizes the forward weight so it is folded).
# ----------------------------------------------------------------------------
def _get_padding(kernel_size, dilation):
    return (kernel_size * dilation - dilation) // 2


def init_generator_params(key, *, initial_channel, resblock, resblock_kernel_sizes,
                          resblock_dilation_sizes, upsample_rates,
                          upsample_initial_channel, upsample_kernel_sizes,
                          gin_channels=0):
    keys = [key]

    def nxt():
        keys[0], sub = jax.random.split(keys[0])
        return sub

    def conv_w(c_out, c_in, k):
        return 0.02 * jax.random.normal(nxt(), (c_out, c_in, k), jnp.float32)

    def conv_b(c_out):
        return 0.02 * jax.random.normal(nxt(), (c_out,), jnp.float32)

    params = {}
    params['conv_pre'] = (conv_w(upsample_initial_channel, initial_channel, 7),
                          conv_b(upsample_initial_channel))
    if gin_channels != 0:
        params['cond'] = (conv_w(upsample_initial_channel, gin_channels, 1),
                          conv_b(upsample_initial_channel))
    params['ups'] = []
    for i, (u, k) in enumerate(zip(upsample_rates, upsample_kernel_sizes)):
        c_in = upsample_initial_channel // 2 ** i
        c_out = upsample_initial_channel // 2 ** (i + 1)
        # ConvTranspose1d weight layout (C_in, C_out, K)
        w = 0.02 * jax.random.normal(nxt(), (c_in, c_out, k), jnp.float32)
        params['ups'].append((w, conv_b(c_out)))
    params['resblocks'] = []
    ch = upsample_initial_channel
    for i in range(len(upsample_rates)):
        ch = upsample_initial_channel // 2 ** (i + 1)
        for (k, d) in zip(resblock_kernel_sizes, resblock_dilation_sizes):
            if resblock == '1':
                rb = {'convs1': [(conv_w(ch, ch, k), conv_b(ch)) for _ in d],
                      'convs2': [(conv_w(ch, ch, k), conv_b(ch)) for _ in d]}
            else:
                rb = {'convs': [(conv_w(ch, ch, k), conv_b(ch)) for _ in d]}
            params['resblocks'].append(rb)
    params['conv_post'] = (conv_w(1, ch, 7), jnp.zeros((1,), jnp.float32))  # bias=False
    return params


# ----------------------------------------------------------------------------
# Convert PyTorch-layout params into kernel-ready layout:
#   (C_out, K*C_in) tap-major bf16 weights, (C_out,1) f32 biases,
#   polyphase-split transposed convs, 1/num_kernels folded downstream.
# ----------------------------------------------------------------------------
def _polyphase_weights(wt, stride):
    """Split ConvTranspose1d weight (C_in, C_out, K) into `stride` correlation
    sub-filters of length M = ceil(K/stride) (already flipped), so each phase is
    a plain Conv1d with padding=M-1 on the un-stuffed input."""
    C_in, C_out, K = wt.shape
    M = -(-K // stride)
    wt_p = jnp.pad(wt, ((0, 0), (0, 0), (0, M * stride - K)))
    w = wt_p.reshape(C_in, C_out, M, stride)   # [..., m, r] with k = m*stride + r
    w = jnp.flip(w, axis=2)                    # correlation (flipped) order
    phases = [jnp.transpose(w[:, :, :, r], (1, 0, 2)) for r in range(stride)]
    return phases, M                           # each phase: (C_out, C_in, M)


def prepare_generator_params(params, *, resblock, resblock_kernel_sizes,
                             resblock_dilation_sizes, upsample_rates,
                             upsample_kernel_sizes):
    nk = len(resblock_kernel_sizes)
    nup = len(upsample_rates)

    def conv_entry(w, b, *, dilation, padding, scale=1.0):
        C_out, C_in, K = w.shape
        w2 = jnp.transpose(w, (0, 2, 1)).reshape(C_out, K * C_in) * scale
        return dict(w2=w2.astype(jnp.bfloat16),
                    b=jnp.asarray(b, jnp.float32).reshape(C_out, 1),
                    K=K, dilation=dilation, padding=padding)

    prep = {'resblock': resblock, 'num_kernels': nk, 'num_upsamples': nup}
    w, b = params['conv_pre']
    prep['conv_pre'] = conv_entry(w, b, dilation=1, padding=3)
    if 'cond' in params:
        wc, bc = params['cond']
        prep['cond'] = conv_entry(wc, bc, dilation=1, padding=0)

    prep['ups'] = []
    for i, (u, k) in enumerate(zip(upsample_rates, upsample_kernel_sizes)):
        wt, bt = params['ups'][i]
        scale = 1.0 if i == 0 else 1.0 / nk      # folded `xs / num_kernels`
        phases, M = _polyphase_weights(wt, u)
        prep['ups'].append(dict(
            stride=u, K=k, M=M, ct_padding=(k - u) // 2,
            phases=[conv_entry(pw, bt, dilation=1, padding=M - 1, scale=scale)
                    for pw in phases]))

    prep['resblocks'] = []
    for i in range(nup):
        for j, (k, ds) in enumerate(zip(resblock_kernel_sizes,
                                        resblock_dilation_sizes)):
            rbp = params['resblocks'][i * nk + j]
            if resblock == '1':
                layers = []
                for li, d in enumerate(ds):
                    w1, b1 = rbp['convs1'][li]
                    wc2, bc2 = rbp['convs2'][li]
                    layers.append(
                        (conv_entry(w1, b1, dilation=d, padding=_get_padding(k, d)),
                         conv_entry(wc2, bc2, dilation=1, padding=_get_padding(k, 1))))
            else:
                layers = [conv_entry(rbp['convs'][li][0], rbp['convs'][li][1],
                                     dilation=d, padding=_get_padding(k, d))
                          for li, d in enumerate(ds)]
            prep['resblocks'].append(layers)

    w, b = params['conv_post']
    post_scale = 1.0 / nk if nup > 0 else 1.0     # folded `xs / num_kernels`
    prep['conv_post'] = conv_entry(w, b, dilation=1, padding=3, scale=post_scale)
    return prep


# ----------------------------------------------------------------------------
# Generator forward (mirrors Generator.forward; scales folded into weights)
# ----------------------------------------------------------------------------
def generator_forward(prep, x, g=None):
    cp = prep['conv_pre']
    x = conv1d_core(x, cp['w2'], cp['b'], K=cp['K'], dilation=cp['dilation'],
                    padding=cp['padding'])                        # conv_pre
    if g is not None:
        cd = prep['cond']
        x = conv1d_core(g, cd['w2'], cd['b'], K=cd['K'], dilation=cd['dilation'],
                        padding=cd['padding'], residual=x)        # x + cond(g) fused
    nk = prep['num_kernels']
    for i in range(prep['num_upsamples']):
        # F.leaky_relu(x, LRELU_SLOPE) is fused into every polyphase conv.
        x = conv_transpose1d_poly(x, prep['ups'][i], slope=LRELU_SLOPE)
        xs = None
        for j in range(nk):
            layers = prep['resblocks'][i * nk + j]
            out = (resblock1_fwd(x, layers) if prep['resblock'] == '1'
                   else resblock2_fwd(x, layers))
            xs = out if xs is None else xs + out
        x = xs  # the /num_kernels is folded into the next stage's weights
    cpost = prep['conv_post']
    # F.leaky_relu (slope 0.01), conv_post (bias=False) and tanh all fused.
    # TODO(synk): conv_post (C_out=1) could be fused into the last resblock
    # epilogue as a VPU channel reduction to save one full-length HBM pass.
    return conv1d_core(x, cpost['w2'], cpost['b'], K=cpost['K'], dilation=1,
                       padding=cpost['padding'], slope=0.01, tanh_out=True,
                       out_dtype=jnp.float32)


if __name__ == "__main__":
    cfg = dict(
        initial_channel=8,
        resblock='1',
        resblock_kernel_sizes=[3, 5],
        resblock_dilation_sizes=[[1, 3, 5], [1, 3, 5]],
        upsample_rates=[2, 2],
        upsample_initial_channel=32,
        upsample_kernel_sizes=[4, 4],
        gin_channels=0,
    )
    key = jax.random.PRNGKey(0)
    pkey, xkey = jax.random.split(key)
    raw_params = init_generator_params(pkey, **cfg)
    prep = prepare_generator_params(
        raw_params,
        resblock=cfg['resblock'],
        resblock_kernel_sizes=cfg['resblock_kernel_sizes'],
        resblock_dilation_sizes=cfg['resblock_dilation_sizes'],
        upsample_rates=cfg['upsample_rates'],
        upsample_kernel_sizes=cfg['upsample_kernel_sizes'],
    )

    B, C, T = 2, cfg['initial_channel'], 16
    x = jax.random.normal(xkey, (B, C, T), jnp.float32)

    y = generator_forward(prep, x, None)
    y = jax.block_until_ready(y)

    total_up = 1
    for u in cfg['upsample_rates']:
        total_up *= u
    assert y.shape == (B, 1, T * total_up), y.shape
    assert bool(jnp.all(jnp.isfinite(y)))
    print("KERNEL_OK")
</pallas_src>

<mosaic_0001>
module attributes {stable_mosaic.version = 11 : i64} {
  func.func @_conv1d_kernel(%arg0: i32, %arg1: i32, %arg2: memref<1x8x128xf32, #tpu.memory_space<vmem>>, %arg3: memref<1x8x128xf32, #tpu.memory_space<vmem>>, %arg4: memref<32x56xbf16, #tpu.memory_space<vmem>>, %arg5: memref<32x1xf32, #tpu.memory_space<vmem>>, %arg6: memref<1x32x128xbf16, #tpu.memory_space<vmem>>, %arg7: memref<8x256xbf16, #tpu.memory_space<vmem>>, %arg8: memref<8x128xbf16, #tpu.memory_space<vmem>>) attributes {dimension_semantics = [#tpu.dimension_semantics<parallel>, #tpu.dimension_semantics<parallel>], iteration_bounds = array<i64: 2, 1>, scalar_prefetch = 0 : i64, scratch_operands = 2 : i64, tpu.core_type = #tpu.core_type<tc>, window_params = [{transform_indices = @transform_0, window_bounds = array<i64: 1, 8, 128>}, {transform_indices = @transform_1, window_bounds = array<i64: 1, 8, 128>}, {pipeline_mode = #tpu.pipeline_mode<synchronous>, transform_indices = @transform_2, window_bounds = array<i64: 32, 56>}, {pipeline_mode = #tpu.pipeline_mode<synchronous>, transform_indices = @transform_3, window_bounds = array<i64: 32, 1>}, {transform_indices = @transform_4, window_bounds = array<i64: 1, 32, 128>}]} {
    %c0 = arith.constant 0 : index
    %c0_0 = arith.constant 0 : index
    %c0_1 = arith.constant 0 : index
    %0 = vector.load %arg2[%c0, %c0_0, %c0_1] : memref<1x8x128xf32, #tpu.memory_space<vmem>>, vector<1x8x128xf32>
    %1 = vector.shape_cast %0 : vector<1x8x128xf32> to vector<8x128xf32>
    %c0_2 = arith.constant 0 : index
    %c0_3 = arith.constant 0 : index
    %c0_4 = arith.constant 0 : index
    %2 = vector.load %arg3[%c0_2, %c0_3, %c0_4] : memref<1x8x128xf32, #tpu.memory_space<vmem>>, vector<1x8x128xf32>
    %3 = vector.shape_cast %2 : vector<1x8x128xf32> to vector<8x128xf32>
    %4 = arith.truncf %1 : vector<8x128xf32> to vector<8x128xbf16>
    %c0_5 = arith.constant 0 : index
    %c0_6 = arith.constant 0 : index
    %5 = vector.load %arg7[%c0_5, %c0_6] : memref<8x256xbf16, #tpu.memory_space<vmem>>, vector<8x128xbf16>
    tpu.vector_store %arg7[%c0_5, %c0_6], %4 {strides = array<i32>} : memref<8x256xbf16, #tpu.memory_space<vmem>>, vector<8x128xbf16>,
    %6 = arith.truncf %3 : vector<8x128xf32> to vector<8x128xbf16>
    %c0_7 = arith.constant 0 : index
    %c128 = arith.constant 128 : index
    %7 = vector.load %arg7[%c0_7, %c128] : memref<8x256xbf16, #tpu.memory_space<vmem>>, vector<8x128xbf16>
    tpu.vector_store %arg7[%c0_7, %c128], %6 {strides = array<i32>} : memref<8x256xbf16, #tpu.memory_space<vmem>>, vector<8x128xbf16>,
    %cst = arith.constant 0.000000e+00 : f32
    %8 = vector.broadcast %cst : f32 to vector<32x128xf32>
    %c0_8 = arith.constant 0 : index
    %c0_9 = arith.constant 0 : index
    %9 = vector.load %arg4[%c0_8, %c0_9] : memref<32x56xbf16, #tpu.memory_space<vmem>>, vector<32x8xbf16>
    %c0_10 = arith.constant 0 : index
    %c0_11 = arith.constant 0 : index
    %10 = vector.load %arg7[%c0_10, %c0_11] : memref<8x256xbf16, #tpu.memory_space<vmem>>, vector<8x128xbf16>
    %cst_12 = arith.constant dense<0.000000e+00> : vector<32x128xf32>
    %11 = tpu.matmul %9, %10, %cst_12 {dimension_numbers = #tpu.dot_dimension_numbers<[1], [0], [0], [1], [0, 0, 1, 1], [], []>} : vector<32x8xbf16>, vector<8x128xbf16>, vector<32x128xf32> -> vector<32x128xf32>
    %12 = arith.addf %8, %11 : vector<32x128xf32>
    %c0_13 = arith.constant 0 : index
    %c8 = arith.constant 8 : index
    %13 = vector.load %arg4[%c0_13, %c8] : memref<32x56xbf16, #tpu.memory_space<vmem>>, vector<32x8xbf16>
    %c0_14 = arith.constant 0 : index
    %c1 = arith.constant 1 : index
    %14 = vector.load %arg7[%c0_14, %c1] : memref<8x256xbf16, #tpu.memory_space<vmem>>, vector<8x128xbf16>
    %cst_15 = arith.constant dense<0.000000e+00> : vector<32x128xf32>
    %15 = tpu.matmul %13, %14, %cst_15 {dimension_numbers = #tpu.dot_dimension_numbers<[1], [0], [0], [1], [0, 0, 1, 1], [], []>} : vector<32x8xbf16>, vector<8x128xbf16>, vector<32x128xf32> -> vector<32x128xf32>
    %16 = arith.addf %12, %15 : vector<32x128xf32>
    %c0_16 = arith.constant 0 : index
    %c16 = arith.constant 16 : index
    %17 = vector.load %arg4[%c0_16, %c16] : memref<32x56xbf16, #tpu.memory_space<vmem>>, vector<32x8xbf16>
    %c0_17 = arith.constant 0 : index
    %c2 = arith.constant 2 : index
    %18 = vector.load %arg7[%c0_17, %c2] : memref<8x256xbf16, #tpu.memory_space<vmem>>, vector<8x128xbf16>
    %cst_18 = arith.constant dense<0.000000e+00> : vector<32x128xf32>
    %19 = tpu.matmul %17, %18, %cst_18 {dimension_numbers = #tpu.dot_dimension_numbers<[1], [0], [0], [1], [0, 0, 1, 1], [], []>} : vector<32x8xbf16>, vector<8x128xbf16>, vector<32x128xf32> -> vector<32x128xf32>
    %20 = arith.addf %16, %19 : vector<32x128xf32>
    %c0_19 = arith.constant 0 : index
    %c24 = arith.constant 24 : index
    %21 = vector.load %arg4[%c0_19, %c24] : memref<32x56xbf16, #tpu.memory_space<vmem>>, vector<32x8xbf16>
    %c0_20 = arith.constant 0 : index
    %c3 = arith.constant 3 : index
    %22 = vector.load %arg7[%c0_20, %c3] : memref<8x256xbf16, #tpu.memory_space<vmem>>, vector<8x128xbf16>
    %cst_21 = arith.constant dense<0.000000e+00> : vector<32x128xf32>
    %23 = tpu.matmul %21, %22, %cst_21 {dimension_numbers = #tpu.dot_dimension_numbers<[1], [0], [0], [1], [0, 0, 1, 1], [], []>} : vector<32x8xbf16>, vector<8x128xbf16>, vector<32x128xf32> -> vector<32x128xf32>
    %24 = arith.addf %20, %23 : vector<32x128xf32>
    %c0_22 = arith.constant 0 : index
    %c32 = arith.constant 32 : index
    %25 = vector.load %arg4[%c0_22, %c32] : memref<32x56xbf16, #tpu.memory_space<vmem>>, vector<32x8xbf16>
    %c0_23 = arith.constant 0 : index
    %c4 = arith.constant 4 : index
    %26 = vector.load %arg7[%c0_23, %c4] : memref<8x256xbf16, #tpu.memory_space<vmem>>, vector<8x128xbf16>
    %cst_24 = arith.constant dense<0.000000e+00> : vector<32x128xf32>
    %27 = tpu.matmul %25, %26, %cst_24 {dimension_numbers = #tpu.dot_dimension_numbers<[1], [0], [0], [1], [0, 0, 1, 1], [], []>} : vector<32x8xbf16>, vector<8x128xbf16>, vector<32x128xf32> -> vector<32x128xf32>
    %28 = arith.addf %24, %27 : vector<32x128xf32>
    %c0_25 = arith.constant 0 : index
    %c40 = arith.constant 40 : index
    %29 = vector.load %arg4[%c0_25, %c40] : memref<32x56xbf16, #tpu.memory_space<vmem>>, vector<32x8xbf16>
    %c0_26 = arith.constant 0 : index
    %c5 = arith.constant 5 : index
    %30 = vector.load %arg7[%c0_26, %c5] : memref<8x256xbf16, #tpu.memory_space<vmem>>, vector<8x128xbf16>
    %cst_27 = arith.constant dense<0.000000e+00> : vector<32x128xf32>
    %31 = tpu.matmul %29, %30, %cst_27 {dimension_numbers = #tpu.dot_dimension_numbers<[1], [0], [0], [1], [0, 0, 1, 1], [], []>} : vector<32x8xbf16>, vector<8x128xbf16>, vector<32x128xf32> -> vector<32x128xf32>
    %32 = arith.addf %28, %31 : vector<32x128xf32>
    %c0_28 = arith.constant 0 : index
    %c48 = arith.constant 48 : index
    %33 = vector.load %arg4[%c0_28, %c48] : memref<32x56xbf16, #tpu.memory_space<vmem>>, vector<32x8xbf16>
    %c0_29 = arith.constant 0 : index
    %c6 = arith.constant 6 : index
    %34 = vector.load %arg7[%c0_29, %c6] : memref<8x256xbf16, #tpu.memory_space<vmem>>, vector<8x128xbf16>
    %cst_30 = arith.constant dense<0.000000e+00> : vector<32x128xf32>
    %35 = tpu.matmul %33, %34, %cst_30 {dimension_numbers = #tpu.dot_dimension_numbers<[1], [0], [0], [1], [0, 0, 1, 1], [], []>} : vector<32x8xbf16>, vector<8x128xbf16>, vector<32x128xf32> -> vector<32x128xf32>
    %36 = arith.addf %32, %35 : vector<32x128xf32>
    %c0_31 = arith.constant 0 : index
    %c0_32 = arith.constant 0 : index
    %37 = vector.load %arg5[%c0_31, %c0_32] : memref<32x1xf32, #tpu.memory_space<vmem>>, vector<32x1xf32>
    %38 = vector.broadcast %37 : vector<32x1xf32> to vector<32x128xf32>
    %39 = arith.addf %36, %38 : vector<32x128xf32>
    %40 = arith.truncf %39 : vector<32x128xf32> to vector<32x128xbf16>
    %c0_33 = arith.constant 0 : index
    %c0_34 = arith.constant 0 : index
    %c0_35 = arith.constant 0 : index
    %41 = vector.load %arg6[%c0_33, %c0_34, %c0_35] : memref<1x32x128xbf16, #tpu.memory_space<vmem>>, vector<1x32x128xbf16>
    %42 = vector.shape_cast %41 : vector<1x32x128xbf16> to vector<32x128xbf16>
    %43 = vector.shape_cast %40 : vector<32x128xbf16> to vector<1x32x128xbf16>
    tpu.vector_store %arg6[%c0_33, %c0_34, %c0_35], %43 {strides = array<i32>} : memref<1x32x128xbf16, #tpu.memory_space<vmem>>, vector<1x32x128xbf16>,
    return
  }
  func.func @transform_0(%arg0: i32, %arg1: i32) -> (i32, i32, i32) {
    %c0_i32 = arith.constant 0 : i32
    %c0_i32_0 = arith.constant 0 : i32
    return %arg0, %c0_i32, %arg1 : i32, i32, i32
  }
  func.func @transform_1(%arg0: i32, %arg1: i32) -> (i32, i32, i32) {
    %c1_i32 = arith.constant 1 : i32
    %0 = arith.addi %arg1, %c1_i32 : i32
    %c1_i32_0 = arith.constant 1 : i32
    %1 = arith.muli %0, %c1_i32_0 : i32
    %c0_i32 = arith.constant 0 : i32
    %c0_i32_1 = arith.constant 0 : i32
    return %arg0, %c0_i32, %1 : i32, i32, i32
  }
  func.func @transform_2(%arg0: i32, %arg1: i32) -> (i32, i32) {
    %c0_i32 = arith.constant 0 : i32
    %c0_i32_0 = arith.constant 0 : i32
    %c0_i32_1 = arith.constant 0 : i32
    return %c0_i32, %c0_i32_0 : i32, i32
  }
  func.func @transform_3(%arg0: i32, %arg1: i32) -> (i32, i32) {
    %c0_i32 = arith.constant 0 : i32
    %c0_i32_0 = arith.constant 0 : i32
    %c0_i32_1 = arith.constant 0 : i32
    return %c0_i32, %c0_i32_0 : i32, i32
  }
  func.func @transform_4(%arg0: i32, %arg1: i32) -> (i32, i32, i32) {
    %c0_i32 = arith.constant 0 : i32
    %c0_i32_0 = arith.constant 0 : i32
    return %arg0, %c0_i32, %arg1 : i32, i32, i32
  }
}

</mosaic_0001>

<bundles_post_ra>
// kernel: tpu_custom_call.1
= control target key start
LH: loop header
LB: loop body
LE: loop exit
PB: predicated region body
PF: predicated region fallthrough
CT: control target
= control target key end

     0   :  { %9 = vsyncpa [#allocation5], 0  ;;  %s1693_s0 = inlined_call_operand.vmem [shape: f32[2,8,256], index: 0, kind: input, shape index: {}]   ;;  %s1694_s1 = inlined_call_operand.hbm [shape: f32[2,8,256], index: 1, kind: input, shape index: {}]   ;;  %s1695_s2 = inlined_call_operand.hbm [shape: bf16[32,56], index: 2, kind: input, shape index: {}]   ;;  %s1696_s3 = inlined_call_operand.vmem [shape: f32[32,1], index: 3, kind: input, shape index: {}]   ;;  %s1697_s4 = inlined_call_operand.hbm [shape: bf16[2,32,128], index: 4, kind: output, shape index: {}]  }
   0x1   :  { %11 = vsyncpa [#allocation5 + $0x1], 0 }
   0x2   :  { %12 = vsyncpa [#allocation8], 0 }
   0x3   :  { %13 = vsyncpa [#allocation6], 0 }
   0x4   :  { %15 = vsyncpa [#allocation6 + $0x1], 0  ;;  %s1420_s15 = smov 0   ;;  %s1422_s16 = smov 0  }
   0x5   :  { %s1424_s17 = smov 0   ;;  %s1426_s18 = smov 0  }
   0x6   :  { %s1428_s19 = smov 0   ;;  %s1430_s20 = smov 0  }
   0x7 LB: > { %s974_s21 = sadd.s32 4294967295, %s1373_s20   ;;  %s975_s22 = sadd.s32 4294967294, %s1373_s20   ;;  %s1373_s20 = sphi %s1430_s20, %s21_s20   ;;  %s1369_s19 = sphi %s1428_s19, %s1720_s19   ;;  %s1365_s18 = sphi %s1426_s18, %s1719_s18   ;;  %s1361_s17 = sphi %s1424_s17, %s1718_s17   ;;  %s1357_s16 = sphi %s1422_s16, %s1717_s16   ;;  %s1353_s15 = sphi %s1420_s15, %s1716_s15  }
   0x8   : > { %p85_p0 = scmp.ne.s32.totalorder %s1357_s16, %s1353_s15  ;;  %p1454_p1 = scmp.eq.s32.totalorder %s974_s21, 0 }
   0x9   : > { %p1458_p2 = scmp.eq.s32.totalorder %s974_s21, 1  ;;  %p159_p3 = scmp.eq.s32.totalorder %s975_s22, 1 }
   0xa   : > { %s1702_s23 = scalar_select %p1454_p1, 1, 0 }
   0xb   : > { %s1703_s24 = scalar_select %p1458_p2, 1, 0 }
   0xc   : > { %p1464_p4 = por %p1454_p1, %p85_p0  ;;  %p976_p5 = scmp.ge.s32.totalorder %s1373_s20, 1 }
   0xd   : > { %p1469_p6 = por %p159_p3, %p85_p0  ;;  %p166_p7 = scmp.lt.s32.totalorder %s1373_s20, 3 }
   0xe   : > { %s1704_s25 = scalar_select %p1464_p4, 1, 0 }
   0xf   : > { %s1705_s26 = scalar_select %p1469_p6, 1, 0 }
  0x10   : > { %p1474_p8 = pnand %p976_p5, %p166_p7  ;;  %s1375_s28 = smov [#allocation7]  }
  0x11   : > { %s178_s29 = sshll.u32 %s1375_s28, 4  ;;  %s33_s5 = sadd.s32 1, %s1369_s19  ;;  %s179_s29 = int_to_ptr.vmem [resolvable:$true] %s178_s29 }
  0x12   : > { %s1706_s27 = scalar_select %p1474_p8, 1, 0 }
  0x13   : > { %p1140_p9 = pneg %p1474_p8  ;;  %s1228_s8 = scalar_lea.hbm %s1695_s2, 256 }
  0x14   : > { %p1229_p12 = scmp.ne.s32.totalorder %s1695_s2, %s1228_s8  ;;  %p1235_p5 = scmp.lt.u32.totalorder %s1228_s8, %s1695_s2 }
  0x15   : > { %p1483_p11 = pnand %p1140_p9, %p1454_p1 }
  0x17   : > { %p1230_p13 = pneg %p1483_p11 }
  0x19   : > { %p1231_p0 = pnand %p1230_p13, %p1229_p12 }
  0x1b   : > { %p1232_p3 = pneg %p1231_p0 }
  0x1d   : > { %p1237_p7 = pnand %p1235_p5, %p1232_p3 }
  0x1f   : > { %1240 = shalt.err (!%p1237_p7)
}
  0x20   : > { %s1241_s13 = scalar_lea.vmem %s179_s29, 256  ;;  %p1249_p1 = scmp.lt.s32.totalorder %s179_s29, %s179_s29 }
  0x21   : > { %p1242_p9 = scmp.ne.s32.totalorder %s179_s29, %s1241_s13  ;;  %p1250_p4 = scmp.lt.s32.totalorder %s1241_s13, %s1241_s13 }
  0x23   : > { %p1244_p10 = pnand %p1242_p9, %p1230_p13  ;;  %p1251_p8 = por %p1250_p4, %p1249_p1 }
  0x25   : > { %p1245_p6 = pneg %p1244_p10 }
  0x27   : > { %p1252_p2 = pnand %p1251_p8, %p1245_p6 }
  0x29   : > { %1255 = shalt.err (!%p1252_p2)
}
  0x2a   : > { %s1376_s14 = smov 64   ;;  %s1377_s21 = smov 4  }
  0x2b   : > { %1143 = dma.hbm_to_vmem [thread:$0]  (!%p1483_p11), %s1695_s2, 256, %s179_s29, [#allocation8], %s1376_s14, %s1376_s14, %s1377_s21  }
  0x2c   : > { %p35_p1 = scmp.ge.s32.totalorder %s33_s5, 2  ;;  %p79_p2 = scmp.ne.s32.totalorder %s1361_s17, %s1357_s16 }
  0x2d   : > { %p80_p4 = scmp.eq.s32.totalorder %s1373_s20, 0  ;;  %s72_s6 = sadd.s32 1, %s1361_s17 }
  0x2e   : > { %s1722_s5 = smov (%p35_p1, %s33_s5), 0  ;;  %p1708_p6 = scmp.ne.s32.totalorder %s1703_s24, 0 }
  0x2f   : > { %s67_s8 = ssub.s32 %s1369_s19, %s1722_s5  ;;  %p81_p10 = por %p80_p4, %p79_p2 }
  0x30   : > { %p1512_p8 = por %p1708_p6, %p79_p2  ;;  %p70_p12 = scmp.eq.s32.totalorder %s67_s8, 0 }
  0x31   : > { %s206_s30 = sand.u32 1, %s1361_s17   ;;  %p1153_p13 = scmp.lt.s32.totalorder %s1373_s20, 2 }
  0x32   : > { %s979_s9 = sshll.u32 %s206_s30, 3  ;;  %s1015_s29 = sshll.u32 %s1369_s19, 8 }
  0x33   : > { %s1521_s10 = scalar_select %p70_p12, %s1361_s17, %s72_s6  }
  0x34   : > { %s898_s13 = scalar_lea.hbm %s1694_s1, %s1015_s29  ;;  %s210_s14 = scalar_lea.vmem [#allocation4], %s979_s9 }
  0x35   : > { %s220_s21 = sshll.u32 %s210_s14, 4  ;;  %s1527_s24 = scalar_lea.hbm %s898_s13, 128  ;;  %s1529_s21 = int_to_ptr.vmem [resolvable:$true] %s220_s21 }
  0x36   : > { %p1531_p11 = pnand %p1153_p13, %p81_p10  ;;  %s207_s28 = scalar_lea.sflag [#allocation5], %s206_s30 }
  0x37   : > { %s1286_s6 = scalar_lea.hbm %s898_s13, 256  ;;  %s1261_s29 = scalar_lea.hbm %s1694_s1, 512 }
  0x38   : > { %p1257_p0 = scmp.ne.s32.totalorder %s1527_s24, %s1286_s6  ;;  %p1258_p3 = pneg %p1531_p11 }
  0x39   : > { %p1262_p9 = scmp.lt.u32.totalorder %s1527_s24, %s1694_s1  ;;  %p1263_p1 = scmp.lt.u32.totalorder %s1261_s29, %s1286_s6 }
  0x3a   : > { %p1259_p5 = pnand %p1258_p3, %p1257_p0  ;;  %p1265_p4 = scmp.lt.u32.totalorder %s1286_s6, %s1527_s24 }
  0x3b   : > { %p1264_p2 = por %p1263_p1, %p1262_p9 }
  0x3c   : > { %p1260_p7 = pneg %p1259_p5 }
  0x3d   : > { %p1266_p6 = por %p1265_p4, %p1264_p2 }
  0x3f   : > { %p1267_p10 = pnand %p1266_p6, %p1260_p7 }
  0x41   : > { %1270 = shalt.err (!%p1267_p10)
}
  0x42   : > { %s1271_s30 = scalar_lea.vmem %s1529_s21, 128  ;;  %s1378_s13 = smov [#allocation4]  }
  0x43   : > { %p1272_p12 = scmp.ne.s32.totalorder %s1529_s21, %s1271_s30  ;;  %s1276_s14 = sshll.u32 %s1378_s13, 4  ;;  %s1277_s14 = int_to_ptr.vmem [resolvable:$false] %s1276_s14 }
  0x44   : > { %s1278_s8 = scalar_lea.vmem %s1277_s14, 256  ;;  %p1279_p5 = scmp.lt.s32.totalorder %s1529_s21, %s1277_s14 }
  0x45   : > { %p1274_p13 = pnand %p1272_p12, %p1258_p3  ;;  %p1280_p9 = scmp.lt.s32.totalorder %s1278_s8, %s1271_s30 }
  0x47   : > { %p1275_p0 = pneg %p1274_p13  ;;  %p1281_p1 = por %p1280_p9, %p1279_p5 }
  0x49   : > { %p1282_p2 = pnand %p1281_p1, %p1275_p0 }
  0x4b   : > { %1285 = shalt.err (!%p1282_p2)
}
  0x4c   : > { %1147 = dma.hbm_to_vmem [thread:$0]  (!%p1531_p11), %s1527_s24, 128, %s1529_s21, %s207_s28  }
  0x4d   : > { %p1711_p7 = scmp.ne.s32.totalorder %s1706_s27, 0 }
  0x4e   : > { %s1562_s6 = sand.u32 (!%p1711_p7), 1, %s1357_s16   ;;  %p1712_p3 = scmp.ne.s32.totalorder (!%p1711_p7), %s1704_s25, 0 }
  0x4f   : > { %229 = sbr.rel (%p1711_p7) target bundleno = 495 (0x1ef), region = 36  ;;  %s983_s9 = sshll.u32 (!%p1711_p7), %s1562_s6, 3 }
  0x50   : > { %s232_s29 = scalar_lea.sflag (!%p1711_p7), [#allocation5], %s1562_s6  ;;  %s235_s11 = scalar_lea.vmem (!%p1711_p7), [#allocation4], %s983_s9 }
  0x56   : > { %1340 = dma.done.wait (%p1712_p3), %s232_s29, 128  }
  0x57   : > { %1342 = vsyncadd (%p1712_p3), %s232_s29, 4294967168  ;;  %p1713_p4 = scmp.ne.s32.totalorder %s1702_s23, 0 }
  0x59   : > { %1344 = dma.done.wait (%p1713_p4), [#allocation8], 256  }
  0x5a   : > { %1346 = vsyncadd (%p1713_p4), [#allocation8], 4294967040  ;;  %p272_p11 = scmp.lt.s32.totalorder %s1365_s18, 1  ;;  %v1579_v0 = vld [vmem:[#allocation7] sm:$0xff]   ;;  %v283_v2 = vld [vmem:[%s235_s11] sm:$0xff]  ;;  %s1379_s25 = smov 104  }
  0x5b   : > { %509 = vrot.lane.b32.xlu1 %v1579_v0, %s1379_s25  ;;  %v1582_v4 = vld [vmem:[#allocation7 + $0x8] sm:$0xff]   ;;  %s1380_s23 = smov 125   ;;  %v1227_v6 = vpack.c.bf16 %v283_v2, %v283_v2  ;;  %s1381_s12 = smov 127   ;;  %v1389_v7 = vmov 0   ;;  %v798_v8 = vld [vmem:[%s1696_s3 + $0x8] sm:$0xff]  ;;  %v799_v10 = vld [vmem:[%s1696_s3 + $0x10] sm:$0xff] }
  0x5c   : > { %s273_s27 = scalar_select %p272_p11, %s1365_s18, 1  ;;  %1223 = vset.pattern.permute.xlu1 %v1389_v7  ;;  %1222 = vset.pattern.permute.xlu0 %v1389_v7  ;;  %v797_v9 = vld [vmem:[%s1696_s3] sm:$0xff]  ;;  %v800_v11 = vld [vmem:[%s1696_s3 + $0x18] sm:$0xff]  ;;  %vm319_vm0 = vcmask 64512   ;;  %vm517_vm1 = vcmask 1022976   ;;  %vm326_vm2 = vcmask 1043456  }
  0x5d   : > { %s1382_s30 = smov 124   ;;  %s1383_s13 = smov 96   ;;  %vm317_vm3 = vcmask 1039360   ;;  %vm589_vm4 = vcmask 1014784   ;;  %vm661_vm5 = vcmask 1006592   ;;  %vm445_vm6 = vcmask 1031168  }
  0x5e   : > { %s1016_s21 = sshll.u32 %s273_s27, 4  ;;  %s1384_s14 = smov 120   ;;  %vm733_vm7 = vcmask 998400  }
  0x5f   : > { %s279_s28 = scalar_lea.vmem %s1693_s0, %s1016_s21  ;;  %511 = vrot.lane.b32.xlu1 %v1582_v4, %s1379_s25  ;;  %s1385_s8 = smov 123  }
  0x60   : > { %v282_v1 = vld [vmem:[%s279_s28] sm:$0xff]  ;;  %s1386_s9 = smov 88   ;;  %s1387_s29 = smov 126  }
  0x61   : > { %v1025_v3 = vpack.c.bf16 %v283_v2, %v282_v1  ;;  %v1226_v5 = vpack.c.bf16 %v282_v1, %v282_v1  ;;  %s1388_s11 = smov 122   ;;  %s1390_s27 = smov 80  }
  0x62   : > { %s1391_s21 = smov 112   ;;  %s846_s24 = scalar_lea.sflag [#allocation6], %s1562_s6 }
  0x63   : > { %1026 = vst [vmem:[#allocation2] sm:$0xff] %v1025_v3   ;;  %513 = vrot.lane.b32.xlu0 %v1226_v5, %s1380_s23  ;;  %315 = vrot.lane.b32.xlu1 %v1227_v6, %s1381_s12  ;;  %s1392_s22 = smov [#allocation9]  }
  0x64   : > { %s1291_s28 = sshll.u32 %s1392_s22, 4  ;;  %s1292_s28 = int_to_ptr.vmem [resolvable:$false] %s1291_s28 }
  0x65   : > { %s1293_s25 = scalar_lea.vmem %s1292_s28, 512 }
  0x67   : > { %515 = vrot.lane.b32.xlu0 %v1227_v6, %s1380_s23  ;;  %587 = vrot.lane.b32.xlu1 %v1227_v6, %s1382_s30 }
  0x6a   : > { %v292_v22 = vld [vmem:[#allocation2] sm:$0xf] }
  0x6b   : > { %313 = vrot.lane.b32.xlu0 %v1226_v5, %s1381_s12  ;;  %581 = vrot.lane.b32.xlu1 %v1579_v0, %s1383_s13  ;;  %v386_v30 = vsel %vm326_vm2, %v292_v22, 0 }
  0x6f   : > { %585 = vrot.lane.b32.xlu0 %v1226_v5, %s1382_s30  ;;  %583 = vrot.lane.b32.xlu1 %v1582_v4, %s1383_s13 }
  0x73   : > { %304 = vrot.lane.b32.xlu0 %v1579_v0, %s1384_s14  ;;  %659 = vrot.lane.b32.xlu1 %v1227_v6, %s1385_s8 }
  0x77   : > { %306 = vrot.lane.b32.xlu0 %v1582_v4, %s1384_s14  ;;  %655 = vrot.lane.b32.xlu1 %v1582_v4, %s1386_s9  ;;  %s985_s14 = sshll.u32 %s1562_s6, 4 }
  0x7b   : > { %657 = vrot.lane.b32.xlu0 %v1226_v5, %s1385_s8  ;;  %443 = vrot.lane.b32.xlu1 %v1227_v6, %s1387_s29  ;;  %s271_s8 = scalar_lea.vmem [#allocation9], %s985_s14 }
  0x7f   : > { %653 = vrot.lane.b32.xlu0 %v1579_v0, %s1386_s9  ;;  %731 = vrot.lane.b32.xlu1 %v1227_v6, %s1388_s11  ;;  %s860_s9 = sshll.u32 %s271_s8, 4  ;;  %s1639_s9 = int_to_ptr.vmem [resolvable:$true] %s860_s9 }
  0x80   : > { %p1294_p13 = scmp.lt.s32.totalorder %s1639_s9, %s1292_s28 }
  0x83   : > { %441 = vrot.lane.b32.xlu0 %v1226_v5, %s1387_s29  ;;  %725 = vrot.lane.b32.xlu1 %v1579_v0, %s1390_s27  ;;  %s1021_s29 = sshll.u32 %s1365_s18, 8  ;;  %s1287_s18 = scalar_lea.vmem %s1639_s9, 256 }
  0x84   : > { %p1288_p6 = scmp.ne.s32.totalorder %s1639_s9, %s1287_s18  ;;  %p1295_p0 = scmp.lt.s32.totalorder %s1293_s25, %s1287_s18 }
  0x86   : > { %p1289_p10 = pnand %p1288_p6, %p1512_p8  ;;  %p1296_p5 = por %p1295_p0, %p1294_p13 }
  0x87   : > { %729 = vrot.lane.b32.xlu0 %v1226_v5, %s1388_s11  ;;  %727 = vrot.lane.b32.xlu1 %v1582_v4, %s1390_s27 }
  0x88   : > { %p1290_p12 = pneg %p1289_p10 }
  0x8a   : > { %p1297_p9 = pnand %p1296_p5, %p1290_p12 }
  0x8b   : > { %437 = vrot.lane.b32.xlu0 %v1579_v0, %s1391_s21  ;;  %808 = vperm.xlu1 %1223, %v798_v8  }
  0x8f   : > { %439 = vrot.lane.b32.xlu0 %v1582_v4, %s1391_s21  ;;  %813 = vperm.xlu1 %1223, %v799_v10   ;;  %s1644_s21 = scalar_lea.hbm %s1697_s4, %s1021_s29 }
  0x93   : > { %803 = vperm.xlu0 %1222, %v797_v9  }
  0x97   : > { %818 = vperm.xlu0 %1222, %v800_v11  }
  0xcd   : > { %v510_v12 = vpop.permute.xlu1 %509 }
  0xce   : > { %1079 = vmatprep.mubr.msk.bf16.mxu0 %vm319_vm0, %v510_v12 }
  0xd1   : > { %v512_v14 = vpop.permute.xlu1 %511 }
  0xd5   : > { %v514_v13 = vpop.permute.xlu0 %513  ;;  %v316_v16 = vpop.permute.xlu1 %315 }
  0xd9   : > { %v516_v15 = vpop.permute.xlu0 %515  ;;  %v588_v20 = vpop.permute.xlu1 %587 }
  0xda   : > { %v518_v17 = vsel %vm517_vm1, %v514_v13, %v516_v15 }
  0xdb   : > { %1128 = vmatprep.subr.msk.bf16.mxu0 %vm326_vm2, %v518_v17  ;;  %v526_v18 = vsel %vm326_vm2, %v518_v17, 0 }
  0xdc   : > { %1078 = vmatpush3.bf16.msra.mxu0 %v526_v18 }
  0xdd   : > { %v314_v19 = vpop.permute.xlu0 %313  ;;  %v582_v25 = vpop.permute.xlu1 %581 }
  0xde   : > { %v318_v21 = vsel %vm317_vm3, %v314_v19, %v316_v16 }
  0xdf   : > { %1125 = vmatprep.subr.msk.bf16.mxu1 %vm326_vm2, %v318_v21  ;;  %1080 = vmatmul.mubr.msk.bf16.vlgmr.msra.gmra.mrb[0].mxu0 %vm319_vm0, %v512_v14  ;;  %v328_v23 = vsel %vm326_vm2, %v318_v21, 0 }
  0xe0   : > { %1060 = vmatpush3.bf16.msra.mxu1 %v328_v23  ;;  %1085 = vmatprep.mubr.msk.bf16.mxu0 %vm319_vm0, %v582_v25 }
  0xe1   : > { %v586_v24 = vpop.permute.xlu0 %585  ;;  %1126 = vmatprep.subr.msk.bf16.mxu1 %vm326_vm2, %v292_v22  ;;  %v584_v29 = vpop.permute.xlu1 %583 }
  0xe2   : > { %v590_v26 = vsel %vm589_vm4, %v586_v24, %v588_v20 }
  0xe3   : > { %v598_v27 = vsel %vm326_vm2, %v590_v26, 0  ;;  %1129 = vmatprep.subr.msk.bf16.mxu0 %vm326_vm2, %v590_v26 }
  0xe4   : > { %1084 = vmatpush3.bf16.msra.mxu0 %v598_v27 }
  0xe5   : > { %v305_v28 = vpop.permute.xlu0 %304  ;;  %v660_v32 = vpop.permute.xlu1 %659 }
  0xe6   : > { %1061 = vmatprep.mubr.msk.bf16.mxu1 %vm319_vm0, %v305_v28 }
  0xe9   : > { %v307_v31 = vpop.permute.xlu0 %306  ;;  %v656_v34 = vpop.permute.xlu1 %655 }
  0xea   : > { %1062 = vmatmul.mubr.msk.bf16.vlgmr.msra.gmra.mrb[0].mxu1 %vm319_vm0, %v307_v31 }
  0xeb   : > { %1086 = vmatmul.mubr.msk.bf16.vlgmr.msra.gmra.mrb[0].mxu0 %vm319_vm0, %v584_v29  ;;  %1066 = vmatpush3.bf16.msra.mxu1 %v386_v30 }
  0xec   : > { %1067 = vmatprep.mubr.msk.bf16.mxu1 %vm319_vm0, %v1579_v0 }
  0xed   : > { %v658_v33 = vpop.permute.xlu0 %657  ;;  %v444_v38 = vpop.permute.xlu1 %443 }
  0xee   : > { %v662_v35 = vsel %vm661_vm5, %v658_v33, %v660_v32 }
  0xef   : > { %v670_v36 = vsel %vm326_vm2, %v662_v35, 0  ;;  %1130 = vmatprep.subr.msk.bf16.mxu0 %vm326_vm2, %v662_v35 }
  0xf0   : > { %1090 = vmatpush3.bf16.msra.mxu0 %v670_v36 }
  0xf1   : > { %v654_v37 = vpop.permute.xlu0 %653  ;;  %v732_v40 = vpop.permute.xlu1 %731 }
  0xf2   : > { %1091 = vmatprep.mubr.msk.bf16.mxu0 %vm319_vm0, %v654_v37 }
  0xf5   : > { %v442_v39 = vpop.permute.xlu0 %441  ;;  %v726_v44 = vpop.permute.xlu1 %725 }
  0xf6   : > { %v446_v41 = vsel %vm445_vm6, %v442_v39, %v444_v38  ;;  %1068 = vmatmul.mubr.msk.bf16.vlgmr.msra.gmra.mrb[0].mxu1 %vm319_vm0, %v1582_v4 }
  0xf7   : > { %v454_v42 = vsel %vm326_vm2, %v446_v41, 0  ;;  %1127 = vmatprep.subr.msk.bf16.mxu1 %vm326_vm2, %v446_v41  ;;  %1092 = vmatmul.mubr.msk.bf16.vlgmr.msra.gmra.mrb[0].mxu0 %vm319_vm0, %v656_v34 }
  0xf8   : > { %1072 = vmatpush3.bf16.msra.mxu1 %v454_v42  ;;  %1097 = vmatprep.mubr.msk.bf16.mxu0 %vm319_vm0, %v726_v44 }
  0xf9   : > { %v730_v43 = vpop.permute.xlu0 %729  ;;  %v728_v48 = vpop.permute.xlu1 %727 }
  0xfa   : > { %v734_v45 = vsel %vm733_vm7, %v730_v43, %v732_v40 }
  0xfb   : > { %v742_v46 = vsel %vm326_vm2, %v734_v45, 0  ;;  %1131 = vmatprep.subr.msk.bf16.mxu0 %vm326_vm2, %v734_v45 }
  0xfc   : > { %1096 = vmatpush3.bf16.msra.mxu0 %v742_v46 }
  0xfd   : > { %v438_v47 = vpop.permute.xlu0 %437 }
  0xfe   : > { %1073 = vmatprep.mubr.msk.bf16.mxu1 %vm319_vm0, %v438_v47 }
 0x101   : > { %v440_v49 = vpop.permute.xlu0 %439 }
 0x102   : > { %1074 = vmatmul.mubr.msk.bf16.vlgmr.msra.gmra.mrb[0].mxu1 %vm319_vm0, %v440_v49 }
 0x103   : > { %1098 = vmatmul.mubr.msk.bf16.vlgmr.msra.gmra.mrb[0].mxu0 %vm319_vm0, %v728_v48 }
 0x10a   : > { %v809_v50 = vpop.permute.xlu1 %808 }
 0x10e   : > { %v814_v53 = vpop.permute.xlu1 %813 }
 0x112   : > { %v804_v51 = vpop.permute.xlu0 %803 }
 0x116   : > { %v819_v1 = vpop.permute.xlu0 %818 }
 0x1d5   : > { %v1075_v52 = vpop.f32.mrb[0].mxu1 }
 0x1d6   : > { %v1099_v54 = vpop.f32.mrb[0].mxu0  ;;  %v490_v55 = vpop.f32.mrb[1].mxu1 }
 0x1d7   : > { %v1101_v56 = vadd.f32 %v1099_v54, %v1075_v52  ;;  %v1076_v57 = vpop.f32.mrb[2].mxu1  ;;  %v778_v58 = vpop.f32.mrb[1].mxu0 }
 0x1d8   : > { %v1102_v59 = vadd.f32 %v778_v58, %v490_v55  ;;  %v493_v60 = vpop.f32.mrb[3].mxu1  ;;  %v1100_v61 = vpop.f32.mrb[2].mxu0 }
 0x1d9   : > { %v1103_v62 = vadd.f32 %v1100_v61, %v1076_v57  ;;  %v781_v63 = vpop.f32.mrb[3].mxu0  ;;  %v823_v2 = vadd.f32 %v1101_v56, %v814_v53 }
 0x1da   : > { %v1104_v0 = vadd.f32 %v781_v63, %v493_v60  ;;  %v821_v4 = vadd.f32 %v1102_v59, %v804_v51 }
 0x1db   : > { %v824_v3 = vadd.f32 %v1103_v62, %v819_v1 }
 0x1dc   : > { %v822_v5 = vadd.f32 %v1104_v0, %v809_v50 }
 0x1dd   : > { %v1035_v6 = vpack.c.bf16 %v824_v3, %v823_v2 }
 0x1de   : > { %v1030_v7 = vpack.c.bf16 %v822_v5, %v821_v4 }
 0x1df   : > { %1037 = vst [vmem:[%s271_s8 + $0x8] sm:$0xff] %v1035_v6  }
 0x1e0   : > { %1031 = vst [vmem:[%s271_s8] sm:$0xff] %v1030_v7  }
 0x1e1   : > { %1300 = shalt.err (!%p1297_p9)
}
 0x1e2   : > { %s1301_s23 = scalar_lea.hbm %s1644_s21, 256  ;;  %s1305_s13 = scalar_lea.hbm %s1697_s4, 512 }
 0x1e3   : > { %p1302_p1 = scmp.ne.s32.totalorder %s1644_s21, %s1301_s23  ;;  %p1306_p3 = scmp.lt.u32.totalorder %s1644_s21, %s1697_s4 }
 0x1e4   : > { %p1307_p4 = scmp.lt.u32.totalorder %s1305_s13, %s1301_s23  ;;  %p1309_p6 = scmp.lt.u32.totalorder %s1301_s23, %s1644_s21 }
 0x1e5   : > { %p1303_p2 = pnand %p1302_p1, %p1512_p8 }
 0x1e6   : > { %p1308_p11 = por %p1307_p4, %p1306_p3 }
 0x1e7   : > { %p1304_p7 = pneg %p1303_p2 }
 0x1e8   : > { %p1310_p10 = por %p1309_p6, %p1308_p11 }
 0x1ea   : > { %p1311_p12 = pnand %p1310_p10, %p1304_p7 }
 0x1ec   : > { %1314 = shalt.err (!%p1311_p12)
}
 0x1ed   : > { %s1393_s29 = smov 64   ;;  %s1394_s11 = smov 4  }
 0x1ee   : > { %1138 = dma.vmem_to_hbm [thread:$0]  (%p1512_p8), %s1639_s9, 256, %s1644_s21, %s846_s24, %s1393_s29, %s1393_s29, %s1394_s11  }
 0x1ef PF: > { %s875_s27 = sand.u32 1, %s1353_s15   ;;  %p1714_p13 = scmp.ne.s32.totalorder %s1705_s26, 0 }
 0x1f0   : > { %p1715_p0 = scmp.ge.s32.totalorder %s1373_s20, 2  ;;  %s876_s18 = scalar_lea.sflag [#allocation6], %s875_s27 }
 0x1f2   : > { %p1149_p5 = pnand %p1715_p0, %p1714_p13 }
 0x1f4   : > { %1348 = dma.done.wait (!%p1149_p5), %s876_s18, 256  }
 0x1f5   : > { %1350 = vsyncadd (!%p1149_p5), %s876_s18, 4294967040  ;;  %s21_s20 = sadd.s32 1, %s1373_s20   ;;  %s1716_s15 = smov %s1357_s16 }
 0x1f6   : > { %p18_p9 = scmp.ge.s32.totalorder %s21_s20, 4   ;;  %s1717_s16 = smov %s1361_s17 }
 0x1f7   : > { %s1718_s17 = smov %s1521_s10  ;;  %s1719_s18 = smov %s1369_s19 }
 0x1f8   : > { %s1720_s19 = smov %s1722_s5  ;;  %20 = sbr.rel (!%p18_p9) target bundleno = 7 (0x7), region = 88 }
 0x1ff   :  { %881 = vsyncpa [#allocation5], 1 }
 0x200   :  { %883 = vsyncpa [#allocation5 + $0x1], 1 }
 0x201   :  { %884 = vsyncpa [#allocation8], 1 }
 0x202   :  { %885 = vsyncpa [#allocation6], 1 }
 0x203   :  { %887 = vsyncpa [#allocation6 + $0x1], 1 }

</bundles_post_ra>
